<compile_context>
chip_gen: v7x
topology: tpu7x:2x2x1
jax: 0.10.0
libtpu: 0.0.40
codegen_flags: <defaults>
</compile_context>

<pallas_src>
import functools

import jax
import jax.numpy as jnp
import numpy as np
from jax import lax
from jax.experimental import pallas as pl
from jax.experimental.pallas import tpu as pltpu


# --------------------------------------------------------------------------
# Helpers
# --------------------------------------------------------------------------
def _round_up(x, mult):
    return -(-x // mult) * mult


def _vmem_limit_bytes():
    """Scoped-VMEM limit.  Defaults (16 MiB v5e / 32 MiB v6e,v7x) are far below
    physical (128 / 128 / 64 MiB); raise to ~7/8 of physical, leaving headroom
    for Mosaic's own scratch."""
    try:
        phys = int(pltpu.get_tpu_info().vmem_capacity_bytes)
    except Exception:                      # info query only; v7x-safe fallback
        phys = 64 * 1024 * 1024
    phys = max(phys, 32 * 1024 * 1024)
    return phys * 7 // 8


def _pick_tile_n(n, tile_n=1024):
    """Row-tile size.  Large tiles amortize the ~0.35 us/step grid overhead and
    push this memory-bound layer toward the HBM roofline; when there is a lot
    of work we keep >= 4 grid steps so both v7x TensorCores get pipelined
    iterations.  Multiples of 16 match the native fp16/bf16 (16, 128) tile."""
    if n <= tile_n and n < 4 * 256:
        return n                                     # single full-dim block
    return max(16, min(tile_n, _round_up(pl.cdiv(n, 4), 16)))


# --------------------------------------------------------------------------
# Kernels
# --------------------------------------------------------------------------
def _mlp_resident_kernel(y_ref, w_ref, b_ref, o_ref):
    """One row tile, full weight resident in VMEM.

    y_ref: (tn, K) fp16/bf16      w_ref: (M, K) bf16 (nn.Linear layout)
    b_ref: (1, M)  bf16           o_ref: (tn, M) fp16/bf16
    MXU runs bf16 x bf16 -> f32 accumulate; bias add + store cast in f32.
    """
    acc = lax.dot_general(
        y_ref[...].astype(jnp.bfloat16), w_ref[...],
        dimension_numbers=(((1,), (1,)), ((), ())),   # y @ W^T, no transpose
        preferred_element_type=jnp.float32)
    o_ref[...] = (acc + b_ref[...].astype(jnp.float32)).astype(o_ref.dtype)


def _mlp_tiled_kernel(y_ref, w_ref, b_ref, o_ref, acc_ref, *, k_total, tk):
    """(N, M, K)-tiled path for weights too large to keep resident in VMEM."""
    kk = pl.program_id(2)

    @pl.when(kk == 0)
    def _init():
        acc_ref[...] = jnp.zeros_like(acc_ref)

    y = y_ref[...].astype(jnp.bfloat16)
    w = w_ref[...]
    if k_total % tk:     # ragged last K block: zero out-of-range columns
        col = lax.broadcasted_iota(jnp.int32, (1, tk), 1)
        valid = col < (k_total - kk * tk)
        y = jnp.where(valid, y, jnp.zeros_like(y))
        w = jnp.where(valid, w, jnp.zeros_like(w))

    acc_ref[...] += lax.dot_general(
        y, w, dimension_numbers=(((1,), (1,)), ((), ())),
        preferred_element_type=jnp.float32)

    @pl.when(kk == pl.num_programs(2) - 1)
    def _store():
        o_ref[...] = (acc_ref[...] + b_ref[...].astype(jnp.float32)
                      ).astype(o_ref.dtype)


# --------------------------------------------------------------------------
# pallas_call wrappers
# --------------------------------------------------------------------------
def _linear_resident(y2d, w, b_row, out_dtype, tn, vmem_limit, cost):
    n, k = y2d.shape
    m = w.shape[0]
    return pl.pallas_call(
        _mlp_resident_kernel,
        out_shape=jax.ShapeDtypeStruct((n, m), out_dtype),
        grid=(pl.cdiv(n, tn),),
        in_specs=[
            pl.BlockSpec((tn, k), lambda i: (i, 0)),            # row tile
            pl.BlockSpec((m, k), lambda i: (0, 0),              # full weight,
                         pipeline_mode=pl.Buffered(buffer_count=1)),  # 1 buffer
            pl.BlockSpec((1, m), lambda i: (0, 0),
                         pipeline_mode=pl.Buffered(buffer_count=1)),
        ],
        out_specs=pl.BlockSpec((tn, m), lambda i: (i, 0)),
        compiler_params=pltpu.CompilerParams(
            dimension_semantics=("parallel",),
            vmem_limit_bytes=vmem_limit),
        cost_estimate=cost,
    )(y2d, w, b_row)


def _linear_tiled(y2d, w, b_row, out_dtype, tn, tm, tk, vmem_limit, cost):
    n, k = y2d.shape
    m = w.shape[0]
    kernel = functools.partial(_mlp_tiled_kernel, k_total=k, tk=tk)
    return pl.pallas_call(
        kernel,
        out_shape=jax.ShapeDtypeStruct((n, m), out_dtype),
        grid=(pl.cdiv(n, tn), pl.cdiv(m, tm), pl.cdiv(k, tk)),
        in_specs=[
            pl.BlockSpec((tn, tk), lambda i, j, kk: (i, kk)),
            pl.BlockSpec((tm, tk), lambda i, j, kk: (j, kk)),
            pl.BlockSpec((1, tm), lambda i, j, kk: (0, j)),
        ],
        out_specs=pl.BlockSpec((tn, tm), lambda i, j, kk: (i, j)),
        scratch_shapes=[pltpu.VMEM((tn, tm), jnp.float32)],
        compiler_params=pltpu.CompilerParams(
            dimension_semantics=("parallel", "parallel", "arbitrary"),
            vmem_limit_bytes=vmem_limit),
        cost_estimate=cost,
    )(y2d, w, b_row)


def _linear(y2d, w, b_row, out_dtype, force_tiled=False):
    n, k = y2d.shape
    m = w.shape[0]
    vmem_limit = _vmem_limit_bytes()
    cost = pl.CostEstimate(flops=2 * n * k * m, transcendentals=0,
                           bytes_accessed=2 * (n * k + m * k + m + n * m))

    tn = _pick_tile_n(n)
    resident_bytes = (m * k * 2 + m * 2       # weight + bias, single-buffered
                      + 2 * tn * k * 2        # double-buffered input row tiles
                      + 2 * tn * m * 2        # double-buffered output row tiles
                      + tn * m * 4)           # f32 matmul result before cast
    if not force_tiled and resident_bytes <= vmem_limit * 7 // 10:
        return _linear_resident(y2d, w, b_row, out_dtype, tn, vmem_limit, cost)

    # Weight does not fit VMEM (e.g. v7x 64 MiB/TC): tile M and K too.
    tm = m if m <= 512 else 512               # 512 = 2 x 256-wide MXU tiles
    tk = k if k <= 1024 else 1024             # multiple of 128 lanes
    tn_t = min(tn, 512)
    return _linear_tiled(y2d, w, b_row, out_dtype, tn_t, tm, tk,
                         vmem_limit, cost)


# --------------------------------------------------------------------------
# fp16 I/O support probe (one-time, cached)
# --------------------------------------------------------------------------
_F16_IO_SUPPORTED = None


def _f16_io_supported():
    """Probe Mosaic fp16 ref support (f16 load, f16->bf16 convert, f32->f16
    store) once with a tiny known-good kernel.  Keeps the real kernels free of
    any try/except so genuine errors are never silently masked."""
    global _F16_IO_SUPPORTED
    if _F16_IO_SUPPORTED is None:
        def probe(x_ref, o_ref):
            v = x_ref[...].astype(jnp.bfloat16).astype(jnp.float32)
            o_ref[...] = (v + 1.0).astype(jnp.float16)
        try:
            x = jnp.zeros((16, 128), jnp.float16)
            jax.block_until_ready(
                pl.pallas_call(
                    probe,
                    out_shape=jax.ShapeDtypeStruct((16, 128), jnp.float16))(x))
            _F16_IO_SUPPORTED = True
        except Exception:        # dtype-support probe only
            _F16_IO_SUPPORTED = False
    return _F16_IO_SUPPORTED


# --------------------------------------------------------------------------
# Public API: parameter prep (once) + forward
# --------------------------------------------------------------------------
def prepare_params(weight, bias):
    """One-time parameter prep, outside the forward path (analogous to module
    init / self.half()): keep nn.Linear's native (out_dim, in_dim) layout (no
    transpose — the kernel contracts the trailing dim of both operands) and
    store in bf16, the MXU's native 16-bit input type."""
    w = jnp.asarray(weight).astype(jnp.bfloat16)                # (M, K)
    b = jnp.asarray(bias).astype(jnp.bfloat16).reshape(1, -1)   # (1, M)
    return w, b


def mlp_forward(y, w_bf16, b_row_bf16, *, force_tiled=False):
    """JAX/Pallas equivalent of MLP.forward: y = y.half(); return Linear(y).

    y           : (..., input_dim), any float dtype (cast to fp16 = y.half())
    w_bf16      : (output_dim, input_dim) bf16, from prepare_params
    b_row_bf16  : (1, output_dim) bf16, from prepare_params
    returns     : (..., output_dim) float16
    """
    y16 = y.astype(jnp.float16)                  # .half()
    lead, k = y16.shape[:-1], y16.shape[-1]
    m = w_bf16.shape[0]

    if _f16_io_supported():
        y_io, io_dtype = y16, jnp.float16
    else:
        # bf16 HBM I/O fallback for Mosaic builds without f16 refs.
        y_io, io_dtype = y16.astype(jnp.bfloat16), jnp.bfloat16

    out2d = _linear(y_io.reshape(-1, k), w_bf16, b_row_bf16, io_dtype,
                    force_tiled=force_tiled)
    return out2d.astype(jnp.float16).reshape(*lead, m)


# --------------------------------------------------------------------------
# Demo / self-test
# --------------------------------------------------------------------------
if __name__ == "__main__":
    # Small shapes implied by the module: batch=2, seq=8, input_dim=32,
    # output_dim=128 (lane-dense output -> unmasked stores).
    B, T, IN, OUT = 2, 8, 32, 128

    key = jax.random.PRNGKey(0)
    k_w, k_b, k_y = jax.random.split(key, 3)
    weight = (jax.random.normal(k_w, (OUT, IN), jnp.float32) * 0.05
              ).astype(jnp.float16)              # nn.Linear (out, in), .half()
    bias = (jax.random.normal(k_b, (OUT,), jnp.float32) * 0.05
            ).astype(jnp.float16)
    y = jax.random.normal(k_y, (B, T, IN), jnp.float32)  # forward() .half()s it

    w_bf, b_row = prepare_params(weight, bias)   # once, outside forward

    out = jax.block_until_ready(mlp_forward(y, w_bf, b_row))
    assert out.shape == (B, T, OUT) and out.dtype == jnp.float16

    # Also exercise the general (N, M, K)-tiled path (used when the weight is
    # too large to stay resident in VMEM, e.g. 4k x 4k on v7x's 64 MiB/TC).
    out_tiled = jax.block_until_ready(
        mlp_forward(y, w_bf, b_row, force_tiled=True))

    # Reference: f32 math on the fp16-cast input and the original fp16 params.
    y_h = y.astype(jnp.float16).astype(jnp.float32).reshape(-1, IN)
    ref = (y_h @ weight.astype(jnp.float32).T
           + bias.astype(jnp.float32)).reshape(B, T, OUT)
    np.testing.assert_allclose(np.asarray(out, np.float32), np.asarray(ref),
                               rtol=2e-2, atol=2e-2)
    np.testing.assert_allclose(np.asarray(out_tiled, np.float32),
                               np.asarray(ref), rtol=2e-2, atol=2e-2)

    print("KERNEL_OK")
</pallas_src>

<mosaic_0001>
module attributes {stable_mosaic.version = 11 : i64} {
  func.func @_mlp_resident_kernel(%arg0: i32, %arg1: memref<16x32xbf16, #tpu.memory_space<vmem>>, %arg2: memref<128x32xbf16, #tpu.memory_space<vmem>>, %arg3: memref<1x128xbf16, #tpu.memory_space<vmem>>, %arg4: memref<16x128xbf16, #tpu.memory_space<vmem>>) attributes {dimension_semantics = [#tpu.dimension_semantics<parallel>], iteration_bounds = array<i64: 1>, scalar_prefetch = 0 : i64, scratch_operands = 0 : i64, tpu.core_type = #tpu.core_type<tc>, window_params = [{transform_indices = @transform_0, window_bounds = array<i64: 16, 32>}, {pipeline_mode = #tpu.pipeline_mode<synchronous>, transform_indices = @transform_1, window_bounds = array<i64: 128, 32>}, {pipeline_mode = #tpu.pipeline_mode<synchronous>, transform_indices = @transform_2, window_bounds = array<i64: 1, 128>}, {transform_indices = @transform_3, window_bounds = array<i64: 16, 128>}]} {
    %c0 = arith.constant 0 : index
    %c0_0 = arith.constant 0 : index
    %0 = vector.load %arg1[%c0, %c0_0] : memref<16x32xbf16, #tpu.memory_space<vmem>>, vector<16x32xbf16>
    %c0_1 = arith.constant 0 : index
    %c0_2 = arith.constant 0 : index
    %1 = vector.load %arg2[%c0_1, %c0_2] : memref<128x32xbf16, #tpu.memory_space<vmem>>, vector<128x32xbf16>
    %cst = arith.constant dense<0.000000e+00> : vector<16x128xf32>
    %2 = tpu.matmul %0, %1, %cst {dimension_numbers = #tpu.dot_dimension_numbers<[1], [1], [0], [0], [0, 0, 1, 0], [], []>} : vector<16x32xbf16>, vector<128x32xbf16>, vector<16x128xf32> -> vector<16x128xf32>
    %c0_3 = arith.constant 0 : index
    %c0_4 = arith.constant 0 : index
    %3 = vector.load %arg3[%c0_3, %c0_4] : memref<1x128xbf16, #tpu.memory_space<vmem>>, vector<1x128xbf16>
    %4 = arith.extf %3 : vector<1x128xbf16> to vector<1x128xf32>
    %5 = vector.broadcast %4 : vector<1x128xf32> to vector<16x128xf32>
    %6 = arith.addf %2, %5 : vector<16x128xf32>
    %7 = arith.truncf %6 : vector<16x128xf32> to vector<16x128xbf16>
    %c0_5 = arith.constant 0 : index
    %c0_6 = arith.constant 0 : index
    %8 = vector.load %arg4[%c0_5, %c0_6] : memref<16x128xbf16, #tpu.memory_space<vmem>>, vector<16x128xbf16>
    tpu.vector_store %arg4[%c0_5, %c0_6], %7 {strides = array<i32>} : memref<16x128xbf16, #tpu.memory_space<vmem>>, vector<16x128xbf16>,
    return
  }
  func.func @transform_0(%arg0: i32) -> (i32, i32) {
    %c0_i32 = arith.constant 0 : i32
    %c0_i32_0 = arith.constant 0 : i32
    return %arg0, %c0_i32 : i32, i32
  }
  func.func @transform_1(%arg0: i32) -> (i32, i32) {
    %c0_i32 = arith.constant 0 : i32
    %c0_i32_0 = arith.constant 0 : i32
    %c0_i32_1 = arith.constant 0 : i32
    return %c0_i32, %c0_i32_0 : i32, i32
  }
  func.func @transform_2(%arg0: i32) -> (i32, i32) {
    %c0_i32 = arith.constant 0 : i32
    %c0_i32_0 = arith.constant 0 : i32
    %c0_i32_1 = arith.constant 0 : i32
    return %c0_i32, %c0_i32_0 : i32, i32
  }
  func.func @transform_3(%arg0: i32) -> (i32, i32) {
    %c0_i32 = arith.constant 0 : i32
    %c0_i32_0 = arith.constant 0 : i32
    return %arg0, %c0_i32 : i32, i32
  }
}

</mosaic_0001>

<bundles_post_ra>
// kernel: tpu_custom_call.1
= control target key start
LH: loop header
LB: loop body
LE: loop exit
PB: predicated region body
PF: predicated region fallthrough
CT: control target
= control target key end

     0   :  { %v266_v1 = vmov 0.0   ;;  %vm85_vm0 = vcmask 261120   ;;  %vm267_vm1 = vmmov 0   ;;  %s342_s0 = inlined_call_operand.vmem [shape: bf16[16,32], index: 0, kind: input, shape index: {}]   ;;  %s343_s1 = inlined_call_operand.vmem [shape: bf16[128,32], index: 1, kind: input, shape index: {}]   ;;  %s344_s2 = inlined_call_operand.vmem [shape: bf16[1,128], index: 2, kind: input, shape index: {}]   ;;  %s345_s3 = inlined_call_operand.hbm [shape: bf16[16,128], index: 3, kind: output, shape index: {}]  }
   0x1   :  { %v233_v0 = vld [vmem:[%s343_s1] sm:$0xff]   ;;  %208 = vmatprep.subr.bf16.mxu0 %v266_v1  ;;  %v234_v3 = vld [vmem:[%s343_s1 + $0x8] sm:$0xff]   ;;  %224 = vmatprep.mubr.msk.bf16.mxu0 %vm267_vm1, %v266_v1 }
   0x2   :  { %v90_v2 = vsel %vm85_vm0, %v233_v0, 0  ;;  %v93_v4 = vsel %vm85_vm0, %v234_v3, 0 }
   0x3   :  { %209 = vmatpush3.bf16.xpose.msra.mxu0 %v90_v2 }
   0x4   :  { %210 = vmatprep.subr.bf16.mxu0 %v266_v1 }
   0x5   :  { %8 = vsyncpa [#allocation3], 0  ;;  %v235_v5 = vld [vmem:[%s343_s1 + $0x10] sm:$0xff]   ;;  %v236_v7 = vld [vmem:[%s343_s1 + $0x18] sm:$0xff]   ;;  %v36_v18 = vlaneseq }
   0x6   :  { %v96_v6 = vsel %vm85_vm0, %v235_v5, 0  ;;  %v99_v8 = vsel %vm85_vm0, %v236_v7, 0  ;;  %v237_v9 = vld [vmem:[%s343_s1 + $0x20] sm:$0xff]   ;;  %v238_v11 = vld [vmem:[%s343_s1 + $0x28] sm:$0xff]   ;;  %v239_v13 = vld [vmem:[%s343_s1 + $0x30] sm:$0xff]  }
   0x7   :  { %v102_v10 = vsel %vm85_vm0, %v237_v9, 0  ;;  %v105_v12 = vsel %vm85_vm0, %v238_v11, 0  ;;  %v108_v14 = vsel %vm85_vm0, %v239_v13, 0  ;;  %v240_v15 = vld [vmem:[%s343_s1 + $0x38] sm:$0xff]   ;;  %v241_v17 = vld [vmem:[%s342_s0] sm:$0xff]   ;;  %v37_v19 = vshrl.u32 %v36_v18, 7 }
   0x8   :  { %v111_v16 = vsel %vm85_vm0, %v240_v15, 0  ;;  %v34_v20 = vld [vmem:[%s344_s2] sm:$0x1]  ;;  %s268_s1 = smov [#allocation2]  }
   0x9   :  { %v35_v21 = vunpack.c.l.bf16 %v34_v20  ;;  %v38_v22 = vsub.s32 0, %v37_v19  ;;  %s169_s5 = sshll.u32 %s268_s1, 4  ;;  %s170_s5 = int_to_ptr.vmem [resolvable:$true] %s169_s5 }
   0xa   :  { %s242_s0 = scalar_lea.vmem %s170_s5, 128  ;;  %p247_p1 = scmp.lt.s32.totalorder %s170_s5, %s170_s5 }
   0xb   :  { %211 = vmatpush3.bf16.xpose.msra.mxu0 %v93_v4  ;;  %v39_v23 = vrot.slane %v35_v21, %v38_v22  ;;  %p243_p0 = scmp.ne.s32.totalorder %s170_s5, %s242_s0  ;;  %p248_p2 = scmp.lt.s32.totalorder %s242_s0, %s242_s0 }
   0xc   :  { %212 = vmatprep.subr.bf16.mxu0 %v266_v1 }
   0xd   :  { %p249_p3 = por %p248_p2, %p247_p1 }
   0xf   :  { %p250_p4 = pnand %p249_p3, %p243_p0 }
  0x13   :  { %213 = vmatpush3.bf16.xpose.msra.mxu0 %v96_v6 }
  0x14   :  { %214 = vmatprep.subr.bf16.mxu0 %v266_v1 }
  0x1b   :  { %215 = vmatpush3.bf16.xpose.msra.mxu0 %v99_v8 }
  0x1c   :  { %216 = vmatprep.subr.bf16.mxu0 %v266_v1 }
  0x23   :  { %217 = vmatpush3.bf16.xpose.msra.mxu0 %v102_v10 }
  0x24   :  { %218 = vmatprep.subr.bf16.mxu0 %v266_v1 }
  0x2b   :  { %219 = vmatpush3.bf16.xpose.msra.mxu0 %v105_v12 }
  0x2c   :  { %220 = vmatprep.subr.bf16.mxu0 %v266_v1 }
  0x33   :  { %221 = vmatpush3.bf16.xpose.msra.mxu0 %v108_v14 }
  0x34   :  { %222 = vmatprep.subr.bf16.mxu0 %v266_v1 }
  0x3b   :  { %223 = vmatpush3.bf16.xpose.msra.mxu0 %v111_v16 }
  0x42   :  { %225 = vmatmul.mubr.msk.bf16.vlgmr.msra.gmra.mrb[0].mxu0 %vm85_vm0, %v241_v17 }
 0x115   :  { %v147_v24 = vpop.f32.mrb[0].mxu0 }
 0x116   :  { %v226_v25 = vpop.f32.mrb[1].mxu0  ;;  %v148_v27 = vadd.f32 %v147_v24, %v39_v23 }
 0x117   :  { %v150_v26 = vpop.f32.mrb[2].mxu0 }
 0x118   :  { %v151_v28 = vadd.f32 %v150_v26, %v39_v23  ;;  %v227_v29 = vpop.f32.mrb[3].mxu0 }
 0x11a   :  { %v197_v30 = vpack.c.bf16 %v151_v28, %v148_v27 }
 0x11c   :  { %198 = vst [vmem:[#allocation2] sm:$0xff] %v197_v30  }
 0x11d   :  { %253 = shalt.err (!%p250_p4)
}
 0x11e   :  { %s254_s7 = scalar_lea.hbm %s345_s3, 128 }
 0x11f   :  { %p255_p5 = scmp.ne.s32.totalorder %s345_s3, %s254_s7  ;;  %p258_p6 = scmp.lt.u32.totalorder %s254_s7, %s345_s3 }
 0x121   :  { %p260_p7 = pnand %p258_p6, %p255_p5 }
 0x123   :  { %263 = shalt.err (!%p260_p7)
}
 0x124   :  { %s269_s12 = smov 64   ;;  %s270_s13 = smov 4  }
 0x125   :  { %175 = dma.vmem_to_hbm [thread:$0]  %s170_s5, 128, %s345_s3, [#allocation3], %s269_s12, %s269_s12, %s270_s13  }
 0x126   :  { %264 = dma.done.wait [#allocation3], 128  }
 0x127   :  { %265 = vsyncadd [#allocation3], 4294967168 }
 0x128   :  { %179 = vsyncpa [#allocation3], 1 }

</bundles_post_ra>
